<compile_context>
chip_gen: v7x
topology: tpu7x:2x2x1
jax: 0.10.0
libtpu: 0.0.40
codegen_flags: <defaults>
</compile_context>

<pallas_src>
import jax
import jax.numpy as jnp
from jax import lax
from jax.experimental import pallas as pl
from jax.experimental.pallas import tpu as pltpu


def _round_up(x, m):
    return ((x + m - 1) // m) * m


def critic_kernel(sa_ref, w1_ref, b1_ref, w2_ref, b2_ref, wq_ref, bq_ref, q_ref):
    # fc1 + ReLU: bf16 input / bf16 weights on the MXU, f32 accumulate, f32 bias+ReLU.
    h1 = jnp.dot(sa_ref[...], w1_ref[...], preferred_element_type=jnp.float32)
    h1 = jnp.maximum(h1 + b1_ref[...], 0.0)

    # fc2 + ReLU
    h2 = jnp.dot(h1.astype(jnp.bfloat16), w2_ref[...],
                 preferred_element_type=jnp.float32)
    h2 = jnp.maximum(h2 + b2_ref[...], 0.0)

    # q head (fc2 -> 1) as an "NT" matmul: contract wq[8, fc2] with h2[tm, fc2]
    # on the fc2 axis so the result (8, tm) is lane-dense (batch on lanes).
    # Row 0 holds the real q row (rows 1..7 of wq are zero padding).
    q8 = lax.dot_general(wq_ref[...], h2.astype(jnp.bfloat16),
                         (((1,), (1,)), ((), ())),
                         preferred_element_type=jnp.float32)
    q_ref[0] = q8[0:1, :] + bq_ref[0]           # (1, tm) store into (1, 1, tm) block


def _choose_tile(B, block_batch):
    """Pick (tile_rows, padded_batch). Tiles are multiples of 16 rows (bf16 sublanes)."""
    if B < 256:
        return B, B                               # single full-array block (eval / demo sizes)
    if B <= block_batch:
        tm = _round_up((B + 1) // 2, 16)          # 2 blocks -> both v7x TensorCores get work
        return tm, 2 * tm
    tm = block_batch                              # multiple of 16 by construction
    return tm, _round_up(B, tm)


def _vmem_limit_bytes(tm, d_in, fc1, fc2):
    """Rough per-step VMEM budget (lane-padded, double-buffered streams) + headroom."""
    lanes = lambda n: _round_up(n, 128)
    per_row = (2 * 2 * lanes(d_in)                # bf16 input tile, double-buffered
               + 6 * lanes(fc1)                   # h1: f32 + bf16 temporaries
               + 6 * lanes(fc2))                  # h2: f32 + bf16 temporaries
    fixed = (2 * 2 * (d_in * lanes(fc1) + fc1 * lanes(fc2) + 8 * lanes(fc2))  # bf16 weights
             + 2 * 4 * 8 * (lanes(fc1) + lanes(fc2))                          # f32 biases
             + 2 * 4 * 8 * tm)                                                # (1,1,tm) f32 output
    est = per_row * tm + fixed
    # Raise above v5e's 16 MiB scoped default when needed; cap under v7x's 64 MiB physical.
    return max(16 << 20, min(int(1.5 * est) + (1 << 20), 48 << 20))


def critic_forward(state_action, params, *, block_batch=4096):
    """state_action: [B, input_dims + n_agents*n_actions] bf16 (pre-concatenated by the
    producer / replay buffer).  Returns q: [B, 1] f32."""
    w1, b1, w2, b2, wq8, bq = params
    B, d_in = state_action.shape
    fc1 = w1.shape[1]
    fc2 = w2.shape[1]

    tm, b_pad = _choose_tile(B, block_batch)
    if b_pad != B:
        # Padded rows produce garbage q values; they are sliced off below.
        state_action = jnp.pad(state_action, ((0, b_pad - B), (0, 0)))
    n_blocks = b_pad // tm

    resident = lambda shape: pl.BlockSpec(shape, lambda i: (0, 0))   # weights stay in VMEM

    out = pl.pallas_call(
        critic_kernel,
        out_shape=jax.ShapeDtypeStruct((n_blocks, 1, tm), jnp.float32),
        grid_spec=pltpu.PrefetchScalarGridSpec(
            num_scalar_prefetch=0,
            grid=(n_blocks,),
            in_specs=[
                pl.BlockSpec((tm, d_in), lambda i: (i, 0)),            # state||action tile (bf16)
                resident((d_in, fc1)),                                 # w1  (bf16)
                resident((1, fc1)),                                    # b1  (f32)
                resident((fc1, fc2)),                                  # w2  (bf16)
                resident((1, fc2)),                                    # b2  (f32)
                resident((8, fc2)),                                    # wq rows (bf16, row 0 real)
                pl.BlockSpec(memory_space=pltpu.MemorySpace.SMEM),     # bq scalar
            ],
            out_specs=pl.BlockSpec((1, 1, tm), lambda i: (i, 0, 0)),   # lane-dense q row
        ),
        compiler_params=pltpu.CompilerParams(
            dimension_semantics=("parallel",),                         # v7x megacore split
            vmem_limit_bytes=_vmem_limit_bytes(tm, d_in, fc1, fc2),
        ),
    )(state_action, w1, b1, w2, b2, wq8, bq)

    return out.reshape(-1)[:B].reshape(B, 1)


def pack_state_action(state, action):
    """Producer-side packing (do this at replay-buffer WRITE time, not per forward call)."""
    return jnp.concatenate([state, action], axis=1).astype(jnp.bfloat16)


def init_critic_params(key, input_dims, fc1_dims, fc2_dims, n_agents, n_actions):
    """nn.Linear-style init; matmul weights stored [in, out] bf16, biases f32."""
    d_in = input_dims + n_agents * n_actions
    k1, k2, k3, k4, k5, k6 = jax.random.split(key, 6)

    def lin(kw, kb, fan_in, fan_out):
        bound = 1.0 / jnp.sqrt(fan_in)
        w = jax.random.uniform(kw, (fan_in, fan_out), jnp.float32, -bound, bound)
        b = jax.random.uniform(kb, (1, fan_out), jnp.float32, -bound, bound)
        return w, b

    w1, b1 = lin(k1, k2, d_in, fc1_dims)
    w2, b2 = lin(k3, k4, fc1_dims, fc2_dims)
    wq, bq = lin(k5, k6, fc2_dims, 1)

    wq8 = jnp.zeros((8, fc2_dims), jnp.float32).at[0].set(wq[:, 0])   # row 0 real, rest zero
    return (w1.astype(jnp.bfloat16), b1,
            w2.astype(jnp.bfloat16), b2,
            wq8.astype(jnp.bfloat16), bq.reshape((1,)))


def critic_reference(state, action, params):
    """Pure-JAX reference with identical numerics to the kernel (bf16 MXU inputs,
    f32 accumulate).  NOTE: this matches the kernel, not the all-f32 PyTorch module
    (which it approximates to ~1e-2 relative)."""
    w1, b1, w2, b2, wq8, bq = params
    sa = jnp.concatenate([state, action], axis=1).astype(jnp.bfloat16)
    h1 = jnp.maximum(jnp.dot(sa, w1, preferred_element_type=jnp.float32) + b1, 0.0)
    h2 = jnp.maximum(jnp.dot(h1.astype(jnp.bfloat16), w2,
                             preferred_element_type=jnp.float32) + b2, 0.0)
    q = jnp.dot(h2.astype(jnp.bfloat16), wq8[0:1].T,
                preferred_element_type=jnp.float32) + bq[0]
    return q


# TODO(synk): Adam optimizer state and checkpoint save/load from the PyTorch module are
# host-side training utilities with no Pallas equivalent; only forward() is implemented.

if __name__ == "__main__":
    # Small, module-consistent shapes.
    batch = 2
    input_dims = 32
    n_agents = 3
    n_actions = 4
    fc1_dims = 64
    fc2_dims = 64

    key = jax.random.PRNGKey(0)
    kp, ks, ka = jax.random.split(key, 3)

    params = init_critic_params(kp, input_dims, fc1_dims, fc2_dims, n_agents, n_actions)
    state = jax.random.normal(ks, (batch, input_dims), jnp.float32)
    action = jax.random.normal(ka, (batch, n_agents * n_actions), jnp.float32)

    # Producer-side packing (done once, at storage time in a real replay buffer).
    sa = pack_state_action(state, action)

    q = critic_forward(sa, params)
    jax.block_until_ready(q)

    q_ref = critic_reference(state, action, params)
    assert q.shape == (batch, 1), q.shape
    assert jnp.allclose(q, q_ref, atol=1e-3, rtol=1e-3), (q, q_ref)

    print("KERNEL_OK")
</pallas_src>

<mosaic_0001>
module attributes {stable_mosaic.version = 11 : i64} {
  func.func @critic_kernel(%arg0: i32, %arg1: memref<2x44xbf16, #tpu.memory_space<vmem>>, %arg2: memref<44x64xbf16, #tpu.memory_space<vmem>>, %arg3: memref<1x64xf32, #tpu.memory_space<vmem>>, %arg4: memref<64x64xbf16, #tpu.memory_space<vmem>>, %arg5: memref<1x64xf32, #tpu.memory_space<vmem>>, %arg6: memref<8x64xbf16, #tpu.memory_space<vmem>>, %arg7: memref<1xf32, #tpu.memory_space<smem>>, %arg8: memref<1x1x2xf32, #tpu.memory_space<vmem>>) attributes {dimension_semantics = [#tpu.dimension_semantics<parallel>], iteration_bounds = array<i64: 1>, scalar_prefetch = 0 : i64, scratch_operands = 0 : i64, tpu.core_type = #tpu.core_type<tc>, window_params = [{transform_indices = @transform_0, window_bounds = array<i64: 2, 44>}, {pipeline_mode = #tpu.pipeline_mode<synchronous>, transform_indices = @transform_1, window_bounds = array<i64: 44, 64>}, {pipeline_mode = #tpu.pipeline_mode<synchronous>, transform_indices = @transform_2, window_bounds = array<i64: 1, 64>}, {pipeline_mode = #tpu.pipeline_mode<synchronous>, transform_indices = @transform_3, window_bounds = array<i64: 64, 64>}, {pipeline_mode = #tpu.pipeline_mode<synchronous>, transform_indices = @transform_4, window_bounds = array<i64: 1, 64>}, {pipeline_mode = #tpu.pipeline_mode<synchronous>, transform_indices = @transform_5, window_bounds = array<i64: 8, 64>}, {transform_indices = @transform_6, window_bounds = array<i64: 1>}, {transform_indices = @transform_7, window_bounds = array<i64: 1, 1, 2>}]} {
    %c0 = arith.constant 0 : index
    %c0_0 = arith.constant 0 : index
    %0 = vector.load %arg1[%c0, %c0_0] : memref<2x44xbf16, #tpu.memory_space<vmem>>, vector<2x44xbf16>
    %c0_1 = arith.constant 0 : index
    %c0_2 = arith.constant 0 : index
    %1 = vector.load %arg2[%c0_1, %c0_2] : memref<44x64xbf16, #tpu.memory_space<vmem>>, vector<44x64xbf16>
    %cst = arith.constant dense<0.000000e+00> : vector<2x64xf32>
    %2 = tpu.matmul %0, %1, %cst {dimension_numbers = #tpu.dot_dimension_numbers<[1], [0], [0], [1], [0, 0, 1, 1], [], []>} : vector<2x44xbf16>, vector<44x64xbf16>, vector<2x64xf32> -> vector<2x64xf32>
    %c0_3 = arith.constant 0 : index
    %c0_4 = arith.constant 0 : index
    %3 = vector.load %arg3[%c0_3, %c0_4] : memref<1x64xf32, #tpu.memory_space<vmem>>, vector<1x64xf32>
    %4 = vector.broadcast %3 : vector<1x64xf32> to vector<2x64xf32>
    %5 = arith.addf %2, %4 : vector<2x64xf32>
    %cst_5 = arith.constant 0.000000e+00 : f32
    %6 = vector.broadcast %cst_5 : f32 to vector<2x64xf32>
    %7 = arith.maximumf %5, %6 : vector<2x64xf32>
    %8 = arith.truncf %7 : vector<2x64xf32> to vector<2x64xbf16>
    %c0_6 = arith.constant 0 : index
    %c0_7 = arith.constant 0 : index
    %9 = vector.load %arg4[%c0_6, %c0_7] : memref<64x64xbf16, #tpu.memory_space<vmem>>, vector<64x64xbf16>
    %cst_8 = arith.constant dense<0.000000e+00> : vector<2x64xf32>
    %10 = tpu.matmul %8, %9, %cst_8 {dimension_numbers = #tpu.dot_dimension_numbers<[1], [0], [0], [1], [0, 0, 1, 1], [], []>} : vector<2x64xbf16>, vector<64x64xbf16>, vector<2x64xf32> -> vector<2x64xf32>
    %c0_9 = arith.constant 0 : index
    %c0_10 = arith.constant 0 : index
    %11 = vector.load %arg5[%c0_9, %c0_10] : memref<1x64xf32, #tpu.memory_space<vmem>>, vector<1x64xf32>
    %12 = vector.broadcast %11 : vector<1x64xf32> to vector<2x64xf32>
    %13 = arith.addf %10, %12 : vector<2x64xf32>
    %cst_11 = arith.constant 0.000000e+00 : f32
    %14 = vector.broadcast %cst_11 : f32 to vector<2x64xf32>
    %15 = arith.maximumf %13, %14 : vector<2x64xf32>
    %c0_12 = arith.constant 0 : index
    %c0_13 = arith.constant 0 : index
    %16 = vector.load %arg6[%c0_12, %c0_13] : memref<8x64xbf16, #tpu.memory_space<vmem>>, vector<8x64xbf16>
    %17 = arith.truncf %15 : vector<2x64xf32> to vector<2x64xbf16>
    %cst_14 = arith.constant dense<0.000000e+00> : vector<8x2xf32>
    %18 = tpu.matmul %16, %17, %cst_14 {dimension_numbers = #tpu.dot_dimension_numbers<[1], [1], [0], [0], [0, 0, 1, 0], [], []>} : vector<8x64xbf16>, vector<2x64xbf16>, vector<8x2xf32> -> vector<8x2xf32>
    %19 = vector.extract_strided_slice %18 {offsets = [0, 0], sizes = [1, 2], strides = [1, 1]} : vector<8x2xf32> to vector<1x2xf32>
    %c0_15 = arith.constant 0 : index
    %20 = memref.load %arg7[%c0_15] : memref<1xf32, #tpu.memory_space<smem>>
    %21 = vector.broadcast %20 : f32 to vector<1x2xf32>
    %22 = arith.addf %19, %21 : vector<1x2xf32>
    %c0_16 = arith.constant 0 : index
    %c0_17 = arith.constant 0 : index
    %c0_18 = arith.constant 0 : index
    %23 = vector.load %arg8[%c0_16, %c0_17, %c0_18] : memref<1x1x2xf32, #tpu.memory_space<vmem>>, vector<1x1x2xf32>
    %24 = vector.shape_cast %23 : vector<1x1x2xf32> to vector<1x2xf32>
    %25 = vector.shape_cast %22 : vector<1x2xf32> to vector<1x1x2xf32>
    tpu.vector_store %arg8[%c0_16, %c0_17, %c0_18], %25 {strides = array<i32>} : memref<1x1x2xf32, #tpu.memory_space<vmem>>, vector<1x1x2xf32>,
    return
  }
  func.func @transform_0(%arg0: i32) -> (i32, i32) {
    %c0_i32 = arith.constant 0 : i32
    %c0_i32_0 = arith.constant 0 : i32
    return %arg0, %c0_i32 : i32, i32
  }
  func.func @transform_1(%arg0: i32) -> (i32, i32) {
    %c0_i32 = arith.constant 0 : i32
    %c0_i32_0 = arith.constant 0 : i32
    %c0_i32_1 = arith.constant 0 : i32
    return %c0_i32, %c0_i32_0 : i32, i32
  }
  func.func @transform_2(%arg0: i32) -> (i32, i32) {
    %c0_i32 = arith.constant 0 : i32
    %c0_i32_0 = arith.constant 0 : i32
    %c0_i32_1 = arith.constant 0 : i32
    return %c0_i32, %c0_i32_0 : i32, i32
  }
  func.func @transform_3(%arg0: i32) -> (i32, i32) {
    %c0_i32 = arith.constant 0 : i32
    %c0_i32_0 = arith.constant 0 : i32
    %c0_i32_1 = arith.constant 0 : i32
    return %c0_i32, %c0_i32_0 : i32, i32
  }
  func.func @transform_4(%arg0: i32) -> (i32, i32) {
    %c0_i32 = arith.constant 0 : i32
    %c0_i32_0 = arith.constant 0 : i32
    %c0_i32_1 = arith.constant 0 : i32
    return %c0_i32, %c0_i32_0 : i32, i32
  }
  func.func @transform_5(%arg0: i32) -> (i32, i32) {
    %c0_i32 = arith.constant 0 : i32
    %c0_i32_0 = arith.constant 0 : i32
    %c0_i32_1 = arith.constant 0 : i32
    return %c0_i32, %c0_i32_0 : i32, i32
  }
  func.func @transform_6(%arg0: i32) -> i32 {
    %c0_i32 = arith.constant 0 : i32
    %c0_i32_0 = arith.constant 0 : i32
    return %c0_i32 : i32
  }
  func.func @transform_7(%arg0: i32) -> (i32, i32, i32) {
    %c0_i32 = arith.constant 0 : i32
    %c0_i32_0 = arith.constant 0 : i32
    %c0_i32_1 = arith.constant 0 : i32
    return %arg0, %c0_i32, %c0_i32_0 : i32, i32, i32
  }
}

</mosaic_0001>

<bundles_post_ra>
// kernel: tpu_custom_call.1
= control target key start
LH: loop header
LB: loop body
LE: loop exit
PB: predicated region body
PF: predicated region fallthrough
CT: control target
= control target key end

     0   :  { %13 = vsyncpa [#allocation4], 0  ;;  %s529_s0 = inlined_call_operand.vmem [shape: bf16[2,44], index: 0, kind: input, shape index: {}]   ;;  %s530_s1 = inlined_call_operand.hbm [shape: bf16[44,64], index: 1, kind: input, shape index: {}]   ;;  %s531_s2 = inlined_call_operand.vmem [shape: f32[1,64], index: 2, kind: input, shape index: {}]   ;;  %s532_s3 = inlined_call_operand.hbm [shape: bf16[64,64], index: 3, kind: input, shape index: {}]   ;;  %s533_s4 = inlined_call_operand.vmem [shape: f32[1,64], index: 4, kind: input, shape index: {}]   ;;  %s534_s5 = inlined_call_operand.vmem [shape: bf16[8,64], index: 5, kind: input, shape index: {}]   ;;  %s535_s6 = inlined_call_operand.<no memory space> [shape: f32[1], index: 6, kind: input, shape index: {}]   ;;  %s536_s7 = inlined_call_operand.hbm [shape: f32[1,1,2], index: 7, kind: output, shape index: {}]  }
   0x1   :  { %14 = vsyncpa [#allocation7], 0 }
   0x2   :  { %15 = vsyncpa [#allocation5], 0  ;;  %s428_s24 = smov [#allocation3]   ;;  %s356_s28 = scalar_lea.hbm %s530_s1, 384 }
   0x3   :  { %s23_s25 = sshll.u32 %s428_s24, 4  ;;  %p357_p0 = scmp.ne.s32.totalorder %s530_s1, %s356_s28  ;;  %s24_s25 = int_to_ptr.vmem [resolvable:$true] %s23_s25 }
   0x4   :  { %p360_p1 = scmp.lt.u32.totalorder %s356_s28, %s530_s1 }
   0x6   :  { %p362_p2 = pnand %p360_p1, %p357_p0 }
   0x8   :  { %365 = shalt.err (!%p362_p2)
}
   0x9   :  { %s366_s10 = scalar_lea.vmem %s24_s25, 384  ;;  %p371_p4 = scmp.lt.s32.totalorder %s24_s25, %s24_s25 }
   0xa   :  { %p367_p3 = scmp.ne.s32.totalorder %s24_s25, %s366_s10  ;;  %p372_p5 = scmp.lt.s32.totalorder %s366_s10, %s366_s10 }
   0xc   :  { %p373_p6 = por %p372_p5, %p371_p4 }
   0xe   :  { %p374_p7 = pnand %p373_p6, %p367_p3 }
  0x10   :  { %377 = shalt.err (!%p374_p7)
}
  0x11   :  { %s429_s11 = smov 64   ;;  %s430_s12 = smov 4  }
  0x12   :  { %29 = dma.hbm_to_vmem [thread:$0]  %s530_s1, 384, %s24_s25, [#allocation4], %s429_s11, %s429_s11, %s430_s12  }
  0x13   :  { %s431_s15 = smov [#allocation6]   ;;  %s378_s19 = scalar_lea.hbm %s532_s3, 512 }
  0x14   :  { %s37_s16 = sshll.u32 %s431_s15, 4  ;;  %p379_p8 = scmp.ne.s32.totalorder %s532_s3, %s378_s19  ;;  %s38_s16 = int_to_ptr.vmem [resolvable:$true] %s37_s16 }
  0x15   :  { %p382_p9 = scmp.lt.u32.totalorder %s378_s19, %s532_s3 }
  0x17   :  { %p384_p10 = pnand %p382_p9, %p379_p8 }
  0x19   :  { %387 = shalt.err (!%p384_p10)
}
  0x1a   :  { %s388_s24 = scalar_lea.vmem %s38_s16, 512  ;;  %p393_p12 = scmp.lt.s32.totalorder %s38_s16, %s38_s16 }
  0x1b   :  { %p389_p11 = scmp.ne.s32.totalorder %s38_s16, %s388_s24  ;;  %p394_p13 = scmp.lt.s32.totalorder %s388_s24, %s388_s24 }
  0x1d   :  { %p395_p0 = por %p394_p13, %p393_p12 }
  0x1f   :  { %p396_p1 = pnand %p395_p0, %p389_p11 }
  0x21   :  { %399 = shalt.err (!%p396_p1)
}
  0x22   :  { %43 = dma.hbm_to_vmem [thread:$0]  %s532_s3, 512, %s38_s16, [#allocation7], %s429_s11, %s429_s11, %s430_s12  }
  0x23   :  { %422 = dma.done.wait [#allocation4], 384  }
  0x24   :  { %423 = vsyncadd [#allocation4], 4294966912 }
  0x25   :  { %424 = dma.done.wait [#allocation7], 512  }
  0x26   :  { %425 = vsyncadd [#allocation7], 4294966784  ;;  %v432_v0 = vmov 0.0   ;;  %vm433_vm0 = vmmov 0   ;;  %v349_v1 = vld [vmem:[#allocation3] sm:$0xff]   ;;  %v350_v2 = vld [vmem:[#allocation3 + $0x8] sm:$0xff]   ;;  %v271_v28 = vstv %s535_s6 }
  0x27   :  { %314 = vmatprep.subr.bf16.mxu0 %v432_v0  ;;  %320 = vmatprep.mubr.msk.bf16.mxu0 %vm433_vm0, %v432_v0  ;;  %v351_v3 = vld [vmem:[#allocation3 + $0x10] sm:$0x3f]   ;;  %vm92_vm1 = vcmask 1045504   ;;  %v352_v4 = vld [vmem:[#allocation6] sm:$0xff]   ;;  %v353_v5 = vld [vmem:[#allocation6 + $0x8] sm:$0xff]   ;;  %vm88_vm2 = vcmask 359424  }
  0x28   :  { %324 = vmatprep.subr.bf16.mxu1 %v432_v0  ;;  %332 = vmatprep.mubr.msk.bf16.mxu1 %vm433_vm0, %v432_v0  ;;  %v94_v6 = vsel %vm92_vm1, %v351_v3, 0  ;;  %v57_v7 = vld [vmem:[%s529_s0] sm:$0x1]  ;;  %v354_v8 = vld [vmem:[#allocation6 + $0x10] sm:$0xff]   ;;  %v355_v9 = vld [vmem:[#allocation6 + $0x18] sm:$0xff]   ;;  %vm177_vm3 = vcmask 523264  }
  0x29   :  { %315 = vmatpush3.bf16.msra.mxu0 %v349_v1  ;;  %325 = vmatpush3.bf16.msra.mxu1 %v352_v4  ;;  %v291_v10 = vld [vmem:[%s531_s2] ss:$0 sm:$0xff]  ;;  %s434_s10 = smov [#allocation8]   ;;  %vm273_vm4 = vcmask 8192  }
  0x2a   :  { %316 = vmatprep.subr.bf16.mxu0 %v432_v0  ;;  %326 = vmatprep.subr.bf16.mxu1 %v432_v0  ;;  %v296_v18 = vld [vmem:[%s533_s4] ss:$0 sm:$0xff]  ;;  %s281_s4 = sshll.u32 %s434_s10, 4  ;;  %s282_s4 = int_to_ptr.vmem [resolvable:$true] %s281_s4 }
  0x2b   :  { %v222_v27 = vld [vmem:[%s534_s5] sm:$0xf]  ;;  %s400_s11 = scalar_lea.vmem %s282_s4, 16  ;;  %s404_s12 = scalar_lea.vmem %s282_s4, 32 }
  0x2c   :  { %p401_p2 = scmp.ne.s32.totalorder %s282_s4, %s400_s11  ;;  %p405_p3 = scmp.lt.s32.totalorder %s282_s4, %s282_s4 }
  0x2d   :  { %317 = vmatpush3.bf16.msra.mxu0 %v350_v2  ;;  %327 = vmatpush3.bf16.msra.mxu1 %v353_v5  ;;  %p406_p4 = scmp.lt.s32.totalorder %s404_s12, %s400_s11 }
  0x2e   :  { %318 = vmatprep.subr.bf16.mxu0 %v432_v0  ;;  %328 = vmatprep.subr.bf16.mxu1 %v432_v0 }
  0x2f   :  { %p407_p5 = por %p406_p4, %p405_p3 }
  0x31   :  { %319 = vmatpush3.bf16.msra.mxu0 %v94_v6  ;;  %329 = vmatpush3.bf16.msra.mxu1 %v354_v8  ;;  %p408_p6 = pnand %p407_p5, %p401_p2 }
  0x32   :  { %336 = vmatprep.subr.bf16.mxu0 %v432_v0  ;;  %330 = vmatprep.subr.bf16.mxu1 %v432_v0 }
  0x34   :  { %321 = vmatmul.mubr.msk.bf16.vlgmr.msra.gmra.mrb[0].mxu0 %vm88_vm2, %v57_v7 }
  0x35   :  { %338 = vmatprep.mubr.msk.bf16.mxu0 %vm433_vm0, %v432_v0  ;;  %331 = vmatpush3.bf16.msra.mxu1 %v355_v9 }
 0x107   :  { %v130_v11 = vpop.f32.mrb[0].mxu0 }
 0x108   :  { %v131_v12 = vadd.f32 %v291_v10, %v130_v11  ;;  %v322_v13 = vpop.f32.mrb[1].mxu0 }
 0x109   :  { %v133_v14 = vpop.f32.mrb[2].mxu0 }
 0x10a   :  { %v136_v15 = vmax.f32 %v131_v12, 0.0  ;;  %v323_v16 = vpop.f32.mrb[3].mxu0 }
 0x10c   :  { %v137_v17 = vpack.c.bf16 %v136_v15, %v136_v15 }
 0x10e   :  { %333 = vmatmul.mubr.msk.bf16.vlgmr.msra.gmra.mrb[0].mxu1 %vm177_vm3, %v137_v17 }
 0x1e1   :  { %v215_v19 = vpop.f32.mrb[0].mxu1 }
 0x1e2   :  { %v216_v20 = vadd.f32 %v296_v18, %v215_v19  ;;  %v334_v21 = vpop.f32.mrb[1].mxu1 }
 0x1e3   :  { %v218_v22 = vpop.f32.mrb[2].mxu1 }
 0x1e4   :  { %v221_v23 = vmax.f32 %v216_v20, 0.0  ;;  %v335_v24 = vpop.f32.mrb[3].mxu1 }
 0x1e6   :  { %v223_v25 = vpack.c.bf16 %v221_v23, %v221_v23 }
 0x1e8   :  { %v228_v26 = vsel %vm177_vm3, %v223_v25, 0 }
 0x1e9   :  { %337 = vmatpush3.bf16.xpose.msra.mxu0 %v228_v26 }
 0x1f0   :  { %339 = vmatmul.mubr.msk.bf16.vlgmr.msra.gmra.mrb[4].mxu0 %vm177_vm3, %v222_v27 }
 0x2c3   :  { %v264_v29 = vpop.f32.mrb[4].mxu0 }
 0x2c4   :  { %v272_v30 = vadd.f32 %v271_v28, %v264_v29  ;;  %v340_v31 = vpop.f32.mrb[5].mxu0 }
 0x2c5   :  { %v267_v32 = vpop.f32.mrb[6].mxu0 }
 0x2c6   :  { %v341_v33 = vpop.f32.mrb[7].mxu0  ;;  %274 = vst.msk [vmem:[#allocation8] sm:$0x1] %vm273_vm4, %v272_v30 }
 0x2c7   :  { %411 = shalt.err (!%p408_p6)
}
 0x2c8   :  { %s412_s13 = scalar_lea.hbm %s536_s7, 16 }
 0x2c9   :  { %p413_p7 = scmp.ne.s32.totalorder %s536_s7, %s412_s13  ;;  %p416_p8 = scmp.lt.u32.totalorder %s412_s13, %s536_s7 }
 0x2cb   :  { %p418_p9 = pnand %p416_p8, %p413_p7 }
 0x2cd   :  { %421 = shalt.err (!%p418_p9)
}
 0x2ce   :  { %284 = dma.vmem_to_hbm [thread:$0]  %s282_s4, 16, %s536_s7, [#allocation5]  }
 0x2cf   :  { %426 = dma.done.wait [#allocation5], 16  }
 0x2d0   :  { %427 = vsyncadd [#allocation5], 4294967280 }
 0x2d1   :  { %288 = vsyncpa [#allocation4], 1 }
 0x2d2   :  { %289 = vsyncpa [#allocation7], 1 }
 0x2d3   :  { %290 = vsyncpa [#allocation5], 1 }

</bundles_post_ra>
